<compile_context>
chip_gen: v5e
topology: v5e:2x2
jax: 0.10.0
libtpu: 0.0.40
codegen_flags: <defaults>
</compile_context>

<pallas_src>
from functools import partial

import jax
import jax.numpy as jnp
from jax.experimental import pallas as pl
from jax.experimental.pallas import tpu as pltpu  # noqa: F401  (TPU backend)


def _full_spec(shape):
    # whole-array VMEM block (no grid); index_map takes no grid args
    return pl.BlockSpec(shape, lambda: (0,) * len(shape))


def fused_generator_kernel(x_ref,      # (B, K)    packed [noise | label]
                           w_enc_ref,  # (K, 2H)   block-diagonal encoder weight
                           gba_ref,    # (3, 2H)   rows: gamma, beta, prelu-alpha
                           w_big_ref,  # (2H, N)   N = output_size * n_lead
                           o_ref):     # (B, N)
    # Fused "both encoders" linear (bias omitted: cancelled by BN mean subtraction).
    y = jnp.dot(x_ref[...], w_enc_ref[...], preferred_element_type=jnp.float32)

    # BatchNorm1d, batch statistics (biased variance), eps = 1e-5.
    mean = jnp.mean(y, axis=0, keepdims=True)
    cen = y - mean
    var = jnp.mean(cen * cen, axis=0, keepdims=True)

    gamma = gba_ref[0:1, :]
    beta = gba_ref[1:2, :]
    alpha = gba_ref[2:3, :]

    z = cen * jax.lax.rsqrt(var + 1e-5) * gamma + beta
    # PReLU (per-lane vector alpha; equals the shared-scalar PyTorch default).
    enc = jnp.where(z > 0, z, alpha * z)

    # All lead generators at once + tanh; column o*n_lead + l == lead l, feature o.
    o_ref[...] = jnp.tanh(
        jnp.dot(enc, w_big_ref[...], preferred_element_type=jnp.float32))


def prepare_params(params):
    """One-time repack of PyTorch-layout parameters into kernel-friendly layout.

    Returns (array_dict, output_size, n_lead).  Only arrays go through jit.
    """
    noise_w = params["noise_w"]                    # (noise_size, H)
    label_w = params["label_w"]                    # (label_size, H)
    ns, H = noise_w.shape
    ls = label_w.shape[0]

    # Block-diagonal encoder weight: [noise | label] @ w_enc == [noise_enc_pre | label_enc_pre]
    w_enc = jnp.zeros((ns + ls, 2 * H), jnp.float32)
    w_enc = w_enc.at[:ns, :H].set(noise_w)
    w_enc = w_enc.at[ns:, H:].set(label_w)

    gamma = jnp.concatenate([params["noise_gamma"], params["label_gamma"]])
    beta = jnp.concatenate([params["noise_beta"], params["label_beta"]])
    alpha = jnp.concatenate([
        jnp.full((H,), params["noise_alpha"], jnp.float32),
        jnp.full((H,), params["label_alpha"], jnp.float32)])
    gba = jnp.stack([gamma, beta, alpha], axis=0)  # (3, 2H)

    lead_w = params["lead_w"]                      # (n_lead, output_size, 2H) PyTorch layout
    n_lead, output_size, two_h = lead_w.shape
    # w_big[k, o*n_lead + l] = lead_w[l, o, k] -> reshape of result == torch.cat(dim=2)
    w_big = jnp.transpose(lead_w, (2, 1, 0)).reshape(two_h, output_size * n_lead)

    return {"w_enc": w_enc, "gba": gba, "w_big": w_big}, int(output_size), int(n_lead)


@partial(jax.jit, static_argnames=("output_size", "n_lead"))
def dense_generator_forward(noise, label, prep, *, output_size, n_lead):
    B = noise.shape[0]
    x = jnp.concatenate([noise, label], axis=1)    # (B, noise_size+label_size)
    K = x.shape[1]
    H2, N = prep["w_big"].shape

    cost = pl.CostEstimate(
        flops=2 * B * K * H2 + 2 * B * H2 * N,
        transcendentals=B * N + 2 * H2,
        bytes_accessed=4 * (B * K + K * H2 + 3 * H2 + H2 * N + B * N),
    )

    out_flat = pl.pallas_call(
        fused_generator_kernel,
        out_shape=jax.ShapeDtypeStruct((B, N), jnp.float32),
        in_specs=[
            _full_spec(x.shape),
            _full_spec(prep["w_enc"].shape),
            _full_spec(prep["gba"].shape),
            _full_spec(prep["w_big"].shape),
        ],
        out_specs=_full_spec((B, N)),
        cost_estimate=cost,
    )(x, prep["w_enc"], prep["gba"], prep["w_big"])

    # Free layout view: column o*n_lead + l is lead l, output feature o,
    # matching torch.cat([...], dim=2).
    # TODO(synk): downstream consumers that can take the flat (B, N) slab should,
    # to avoid a lane-sparse trailing dim of n_lead.
    return out_flat.reshape(B, output_size, n_lead)


def _reference_forward(noise, label, params):
    """Pure-JAX reference mirroring the PyTorch module (with biases)."""
    def encode(x, w, b, gamma, beta, alpha):
        y = x @ w + b
        mean = jnp.mean(y, axis=0, keepdims=True)
        var = jnp.mean((y - mean) ** 2, axis=0, keepdims=True)
        z = (y - mean) * jax.lax.rsqrt(var + 1e-5) * gamma + beta
        return jnp.where(z > 0, z, alpha * z)

    ne = encode(noise, params["noise_w"], params["noise_b"],
                params["noise_gamma"], params["noise_beta"], params["noise_alpha"])
    le = encode(label, params["label_w"], params["label_b"],
                params["label_gamma"], params["label_beta"], params["label_alpha"])
    xcat = jnp.concatenate([ne, le], axis=1)                       # (B, 2H)
    # lead_w: (n_lead, output_size, 2H);  out[b, o, l] = tanh(sum_k xcat[b,k] lead_w[l,o,k])
    return jnp.tanh(jnp.einsum("bk,lok->bol", xcat, params["lead_w"]))


if __name__ == "__main__":
    # Small shapes consistent with the module
    B = 8
    noise_size = 16
    label_size = 8
    hidden_size = 32
    output_size = 32
    n_lead = 4

    key = jax.random.PRNGKey(0)
    ks = jax.random.split(key, 12)

    params = {
        # noise encoder
        "noise_w": 0.1 * jax.random.normal(ks[0], (noise_size, hidden_size), jnp.float32),
        "noise_b": 0.1 * jax.random.normal(ks[1], (hidden_size,), jnp.float32),
        "noise_gamma": 1.0 + 0.1 * jax.random.normal(ks[2], (hidden_size,), jnp.float32),
        "noise_beta": 0.1 * jax.random.normal(ks[3], (hidden_size,), jnp.float32),
        "noise_alpha": jnp.float32(0.25),   # PReLU default init
        # label encoder
        "label_w": 0.1 * jax.random.normal(ks[4], (label_size, hidden_size), jnp.float32),
        "label_b": 0.1 * jax.random.normal(ks[5], (hidden_size,), jnp.float32),
        "label_gamma": 1.0 + 0.1 * jax.random.normal(ks[6], (hidden_size,), jnp.float32),
        "label_beta": 0.1 * jax.random.normal(ks[7], (hidden_size,), jnp.float32),
        "label_alpha": jnp.float32(0.25),
        # lead generators: n_lead bias-free Linear(2H -> output_size) (PyTorch weight layout)
        "lead_w": 0.1 * jax.random.normal(
            ks[8], (n_lead, output_size, 2 * hidden_size), jnp.float32),
    }

    noise = jax.random.normal(ks[9], (B, noise_size), jnp.float32)
    label = jax.random.normal(ks[10], (B, label_size), jnp.float32)

    # One-time parameter preparation (hoisted out of the forward path).
    prep, out_size_static, n_lead_static = prepare_params(params)
    prep = jax.tree.map(jax.block_until_ready, prep)

    out = dense_generator_forward(noise, label, prep,
                                  output_size=out_size_static, n_lead=n_lead_static)
    out = jax.block_until_ready(out)

    assert out.shape == (B, output_size, n_lead)
    assert bool(jnp.all(jnp.isfinite(out)))

    # Numerical sanity check against a pure-JAX reference of the PyTorch module
    # (tolerance loose enough to absorb TPU f32 matmul precision differences).
    ref = jax.block_until_ready(_reference_forward(noise, label, params))
    assert bool(jnp.all(jnp.abs(out - ref) < 5e-2)), float(jnp.max(jnp.abs(out - ref)))

    print("KERNEL_OK")
</pallas_src>

<mosaic_0001>
module attributes {stable_mosaic.version = 11 : i64} {
  func.func @fused_generator_kernel(%arg0: memref<8x24xf32, #tpu.memory_space<vmem>>, %arg1: memref<24x64xf32, #tpu.memory_space<vmem>>, %arg2: memref<3x64xf32, #tpu.memory_space<vmem>>, %arg3: memref<64x128xf32, #tpu.memory_space<vmem>>, %arg4: memref<8x128xf32, #tpu.memory_space<vmem>>) attributes {dimension_semantics = [], scalar_prefetch = 0 : i64, scratch_operands = 0 : i64, tpu.core_type = #tpu.core_type<tc>} {
    %c0 = arith.constant 0 : index
    %c0_0 = arith.constant 0 : index
    %0 = vector.load %arg0[%c0, %c0_0] : memref<8x24xf32, #tpu.memory_space<vmem>>, vector<8x24xf32>
    %c0_1 = arith.constant 0 : index
    %c0_2 = arith.constant 0 : index
    %1 = vector.load %arg1[%c0_1, %c0_2] : memref<24x64xf32, #tpu.memory_space<vmem>>, vector<24x64xf32>
    %cst = arith.constant dense<0.000000e+00> : vector<8x64xf32>
    %2 = tpu.matmul %0, %1, %cst {dimension_numbers = #tpu.dot_dimension_numbers<[1], [0], [0], [1], [0, 0, 1, 1], [], []>} : vector<8x24xf32>, vector<24x64xf32>, vector<8x64xf32> -> vector<8x64xf32>
    %cst_3 = arith.constant dense<0.000000e+00> : vector<64xf32>
    %3 = vector.multi_reduction <add>, %2, %cst_3 [0] : vector<8x64xf32> to vector<64xf32>
    %4 = vector.shape_cast %3 : vector<64xf32> to vector<1x64xf32>
    %cst_4 = arith.constant 8.000000e+00 : f32
    %5 = vector.broadcast %cst_4 : f32 to vector<1x64xf32>
    %6 = arith.divf %4, %5 : vector<1x64xf32>
    %7 = vector.broadcast %6 : vector<1x64xf32> to vector<8x64xf32>
    %8 = arith.subf %2, %7 : vector<8x64xf32>
    %9 = arith.mulf %8, %8 : vector<8x64xf32>
    %cst_5 = arith.constant dense<0.000000e+00> : vector<64xf32>
    %10 = vector.multi_reduction <add>, %9, %cst_5 [0] : vector<8x64xf32> to vector<64xf32>
    %11 = vector.shape_cast %10 : vector<64xf32> to vector<1x64xf32>
    %cst_6 = arith.constant 8.000000e+00 : f32
    %12 = vector.broadcast %cst_6 : f32 to vector<1x64xf32>
    %13 = arith.divf %11, %12 : vector<1x64xf32>
    %c0_7 = arith.constant 0 : index
    %c0_8 = arith.constant 0 : index
    %14 = vector.load %arg2[%c0_7, %c0_8] : memref<3x64xf32, #tpu.memory_space<vmem>>, vector<1x64xf32>
    %c1 = arith.constant 1 : index
    %c0_9 = arith.constant 0 : index
    %15 = vector.load %arg2[%c1, %c0_9] : memref<3x64xf32, #tpu.memory_space<vmem>>, vector<1x64xf32>
    %c2 = arith.constant 2 : index
    %c0_10 = arith.constant 0 : index
    %16 = vector.load %arg2[%c2, %c0_10] : memref<3x64xf32, #tpu.memory_space<vmem>>, vector<1x64xf32>
    %cst_11 = arith.constant 9.99999974E-6 : f32
    %17 = vector.broadcast %cst_11 : f32 to vector<1x64xf32>
    %18 = arith.addf %13, %17 : vector<1x64xf32>
    %19 = math.rsqrt %18 : vector<1x64xf32>
    %20 = vector.broadcast %19 : vector<1x64xf32> to vector<8x64xf32>
    %21 = arith.mulf %8, %20 : vector<8x64xf32>
    %22 = vector.broadcast %14 : vector<1x64xf32> to vector<8x64xf32>
    %23 = arith.mulf %21, %22 : vector<8x64xf32>
    %24 = vector.broadcast %15 : vector<1x64xf32> to vector<8x64xf32>
    %25 = arith.addf %23, %24 : vector<8x64xf32>
    %cst_12 = arith.constant 0.000000e+00 : f32
    %26 = vector.broadcast %cst_12 : f32 to vector<8x64xf32>
    %27 = arith.cmpf ogt, %25, %26 : vector<8x64xf32>
    %28 = vector.broadcast %16 : vector<1x64xf32> to vector<8x64xf32>
    %29 = arith.mulf %28, %25 : vector<8x64xf32>
    %30 = arith.select %27, %25, %29 : vector<8x64xi1>, vector<8x64xf32>
    %c0_13 = arith.constant 0 : index
    %c0_14 = arith.constant 0 : index
    %31 = vector.load %arg3[%c0_13, %c0_14] : memref<64x128xf32, #tpu.memory_space<vmem>>, vector<64x128xf32>
    %cst_15 = arith.constant dense<0.000000e+00> : vector<8x128xf32>
    %32 = tpu.matmul %30, %31, %cst_15 {dimension_numbers = #tpu.dot_dimension_numbers<[1], [0], [0], [1], [0, 0, 1, 1], [], []>} : vector<8x64xf32>, vector<64x128xf32>, vector<8x128xf32> -> vector<8x128xf32>
    %33 = math.tanh %32 : vector<8x128xf32>
    %c0_16 = arith.constant 0 : index
    %c0_17 = arith.constant 0 : index
    %34 = vector.load %arg4[%c0_16, %c0_17] : memref<8x128xf32, #tpu.memory_space<vmem>>, vector<8x128xf32>
    tpu.vector_store %arg4[%c0_16, %c0_17], %33 {strides = array<i32>} : memref<8x128xf32, #tpu.memory_space<vmem>>, vector<8x128xf32>,
    return
  }
}

</mosaic_0001>

<bundles_post_ra>
// kernel: dense_generator_forward.1
= control target key start
LH: loop header
LB: loop body
LE: loop exit
PB: predicated region body
PF: predicated region fallthrough
CT: control target
= control target key end

     0   :  { %9 = vsyncpa [#allocation3], 0  ;;  %s285_s0 = inlined_call_operand.vmem [shape: f32[8,24], index: 0, kind: input, shape index: {}]   ;;  %s286_s1 = inlined_call_operand.vmem [shape: f32[24,64], index: 1, kind: input, shape index: {}]   ;;  %s287_s2 = inlined_call_operand.hbm [shape: f32[3,64], index: 2, kind: input, shape index: {}]   ;;  %s288_s3 = inlined_call_operand.hbm [shape: f32[64,128], index: 3, kind: input, shape index: {}]   ;;  %s289_s4 = inlined_call_operand.vmem [shape: f32[8,128], index: 4, kind: output, shape index: {}]  }
   0x1   :  { %s20_s17 = sshll.u32 %s287_s2, 4  ;;  %s21_s17 = int_to_ptr.hbm [resolvable:$true] %s20_s17 }
   0x2   :  { %10 = vsyncpa [#allocation5], 0  ;;  %s231_s18 = smov [#allocation2]   ;;  %s30_s22 = sshll.u32 %s288_s3, 4  ;;  %s31_s22 = int_to_ptr.hbm [resolvable:$true] %s30_s22 }
   0x3   :  { %s22_s19 = sshll.u32 %s231_s18, 4  ;;  %s232_s23 = smov [#allocation4]   ;;  %s23_s19 = int_to_ptr.vmem [resolvable:$true] %s22_s19 }
   0x4   :  { %25 = dma.hbm_to_vmem [thread:$0]  %s21_s17, 64, %s23_s19, [#allocation3]  }
   0x5   :  { %s32_s24 = sshll.u32 %s232_s23, 4  ;;  %s233_s25 = smov 128   ;;  %s33_s24 = int_to_ptr.vmem [resolvable:$true] %s32_s24 }
   0x6   :  { %s234_s26 = smov 8  }
   0x7   :  { %38 = dma.hbm_to_vmem [thread:$0]  %s31_s22, 1024, %s33_s24, [#allocation5], %s233_s25, %s233_s25, %s234_s26  }
   0x8   :  { %227 = dma.done.wait [#allocation3], 64  }
   0x9   :  { %228 = vsyncadd [#allocation3], 4294967232 }
   0xa   :  { %229 = dma.done.wait [#allocation5], 1024  }
   0xb   :  { %230 = vsyncadd [#allocation5], 4294966272  ;;  %v50_v0 = vld [vmem:[%s286_s1 + $0x10] sm:$0xff]  ;;  %v49_v1 = vld [vmem:[%s286_s1 + $0x8] sm:$0xff]  ;;  %vm51_vm0 = vcmask 195584   ;;  %v235_v4 = vmov 8.0  }
   0xc   :  { %68 = vmatpush.msra.mxu0 %v50_v0  ;;  %v48_v2 = vld [vmem:[%s286_s1] sm:$0xff]  ;;  %173 = vrcp.f32 %v235_v4  ;;  %vm75_vm1 = vcmask 523264   ;;  %v130_v23 = vld [vmem:[#allocation4 + $0x30] sm:$0xff]  ;;  %v129_v25 = vld [vmem:[#allocation4 + $0x28] sm:$0xff] }
   0xd   :  { %v47_v3 = vld [vmem:[%s285_s0] sm:$0xff]  ;;  %v126_v31 = vld [vmem:[#allocation4 + $0x10] sm:$0xff]  ;;  %v125_v32 = vld [vmem:[#allocation4 + $0x8] sm:$0xff] }
   0xe   :  { %69 = vmatpush.msra.mxu0 %v49_v1  ;;  %v131_v21 = vld [vmem:[#allocation4 + $0x38] sm:$0xff]  ;;  %v128_v27 = vld [vmem:[#allocation4 + $0x20] sm:$0xff] }
   0xf   :  { %143 = vmatpush.msra.mxu1 %v131_v21  ;;  %v127_v29 = vld [vmem:[#allocation4 + $0x18] sm:$0xff]  ;;  %v124_v34 = vld [vmem:[#allocation4] sm:$0xff] }
  0x10   :  { %70 = vmatpush.msra.mxu0 %v48_v2  ;;  %v170_v45 = vld [vmem:[#allocation2] ss:$0 sm:$0xff]  ;;  %v171_v48 = vld [vmem:[#allocation2 + $0x1] ss:$0 sm:$0xff]  ;;  %v172_v50 = vld [vmem:[#allocation2 + $0x2] ss:$0 sm:$0xff] }
  0x11   :  { %163 = vmatmul.msk.f32.vlgmr.msra.gmra.mxu0 %vm51_vm0, %v47_v3  ;;  %144 = vmatpush.msra.mxu1 %v130_v23 }
  0x12   :  { %v174_v5 = vpop.eup %173 }
  0x13   :  { %v84_v6 = vmul.f32 8.0, %v174_v5  ;;  %vm88_vm2 = vweird.f32 %v174_v5  ;;  %145 = vmatpush.msra.mxu1 %v129_v25 }
  0x15   :  { %v85_v7 = vsub.f32 1.0, %v84_v6  ;;  %146 = vmatpush.msra.mxu1 %v128_v27 }
  0x17   :  { %v86_v11 = vmul.f32 %v174_v5, %v85_v7  ;;  %147 = vmatpush.msra.mxu1 %v127_v29 }
  0x19   :  { %v87_v14 = vadd.f32 %v174_v5, %v86_v11  ;;  %148 = vmatpush.msra.mxu1 %v126_v31 }
  0x1b   :  { %v89_v17 = vsel %vm88_vm2, %v174_v5, %v87_v14  ;;  %149 = vmatpush.msra.mxu1 %v125_v32 }
  0x1d   :  { %150 = vmatpush.msra.mxu1 %v124_v34 }
  0x8e   :  { %v72_v8 = vpop.f32.mrf.mxu0 }
  0x8f   :  { %v76_v9 = vsel %vm75_vm1, %v72_v8, 0.0 }
  0x90   :  { %v77_v10 = vrot.slane %v76_v9, 4 }
  0x92   :  { %v78_v12 = vadd.f32 %v77_v10, %v76_v9 }
  0x94   :  { %v79_v13 = vrot.slane %v78_v12, 2 }
  0x96   :  { %v80_v15 = vadd.f32 %v79_v13, %v78_v12 }
  0x98   :  { %v81_v16 = vrot.slane %v80_v15, 1 }
  0x9a   :  { %v82_v18 = vadd.f32 %v81_v16, %v80_v15 }
  0x9c   :  { %v90_v19 = vmul.f32 %v89_v17, %v82_v18 }
  0x9e   :  { %v91_v20 = vsub.f32 %v72_v8, %v90_v19 }
  0xa0   :  { %v92_v22 = vmul.f32 %v91_v20, %v91_v20 }
  0xa2   :  { %v93_v24 = vsel %vm75_vm1, %v92_v22, 0.0 }
  0xa3   :  { %v94_v26 = vrot.slane %v93_v24, 4 }
  0xa5   :  { %v95_v28 = vadd.f32 %v94_v26, %v93_v24 }
  0xa7   :  { %v96_v30 = vrot.slane %v95_v28, 2 }
  0xa9   :  { %v97_v33 = vadd.f32 %v96_v30, %v95_v28 }
  0xab   :  { %v98_v35 = vrot.slane %v97_v33, 1 }
  0xad   :  { %v99_v36 = vadd.f32 %v98_v35, %v97_v33 }
  0xaf   :  { %v100_v37 = vmul.f32 %v99_v36, %v89_v17 }
  0xb1   :  { %v104_v38 = vadd.f32 1e-05, %v100_v37 }
  0xb3   :  { %175 = vrsqrt.f32 %v104_v38  ;;  %vm111_vm4 = vweird.f32 %v104_v38 }
  0xb9   :  { %v176_v39 = vpop.eup %175 }
  0xba   :  { %v106_v40 = vmul.f32 %v176_v39, %v104_v38  ;;  %vm112_vm3 = vweird.f32 %v176_v39 }
  0xbb   :  { %vm113_vm5 = vmor %vm111_vm4, %vm112_vm3 }
  0xbc   :  { %v107_v41 = vmul.f32 %v176_v39, %v106_v40 }
  0xbe   :  { %v108_v42 = vmul.f32 0.5, %v107_v41 }
  0xc0   :  { %v109_v43 = vsub.f32 1.5, %v108_v42 }
  0xc2   :  { %v110_v44 = vmul.f32 %v176_v39, %v109_v43 }
  0xc4   :  { %v114_v46 = vsel %vm113_vm5, %v176_v39, %v110_v44 }
  0xc5   :  { %v115_v47 = vmul.f32 %v114_v46, %v91_v20 }
  0xc7   :  { %v117_v49 = vmul.f32 %v170_v45, %v115_v47 }
  0xc9   :  { %v119_v51 = vadd.f32 %v171_v48, %v117_v49 }
  0xcb   :  { %vm120_vm6 = vcmp.gt.f32.partialorder %v119_v51, 0.0  ;;  %v122_v52 = vmul.f32 %v172_v50, %v119_v51 }
  0xcd   :  { %v123_v53 = vsel %vm120_vm6, %v119_v51, %v122_v52 }
  0xce   :  { %164 = vmatmul.msk.f32.vlgmr.msra.gmra.mxu1 %vm75_vm1, %v123_v53 }
 0x14b   :  { %v152_v54 = vpop.f32.mrf.mxu1 }
 0x14c   :  { %177 = vtanh.f32 %v152_v54 }
 0x152   :  { %v178_v55 = vpop.eup %177 }
 0x153   :  { %156 = vst [vmem:[%s289_s4] sm:$0xff] %v178_v55 }
 0x154   :  { %161 = vsyncpa [#allocation3], 1 }
 0x155   :  { %162 = vsyncpa [#allocation5], 1 }

</bundles_post_ra>
